<compile_context>
chip_gen: v7x
topology: tpu7x:2x2x1
jax: 0.10.0
libtpu: 0.0.40
codegen_flags: <defaults>
</compile_context>

<pallas_src>
from functools import partial

import numpy as np
import jax
import jax.numpy as jnp
from jax.experimental import pallas as pl
from jax.experimental.pallas import tpu as pltpu

EPS = 1e-5                           # nn.LayerNorm default eps
VMEM_LIMIT = 48 * 1024 * 1024        # scoped-VMEM limit: leaves headroom on v7x (64 MiB phys)
VMEM_FOLD_BUDGET = 40 * 1024 * 1024  # budget used when sizing the batch fold


# ----------------------------------------------------------------------------
# In-kernel helpers (f32 math)
# ----------------------------------------------------------------------------
def _layernorm(x, w, b):
    # x: (..., D) f32, w/b: (1, D) f32
    mu = jnp.mean(x, axis=-1, keepdims=True)
    var = jnp.mean(jnp.square(x - mu), axis=-1, keepdims=True)
    return (x - mu) * jax.lax.rsqrt(var + EPS) * w + b


def _gelu_tanh(x):
    # TODO(synk): nn.GELU() default is exact erf GELU; tanh approximation used
    # here for a Mosaic-safe EUP lowering (~1e-3 deviation).
    return 0.5 * x * (1.0 + jnp.tanh(0.7978845608028654 * (x + 0.044715 * x * x * x)))


# ----------------------------------------------------------------------------
# Kernels
# ----------------------------------------------------------------------------
def patch_embed_kernel(x_ref, w_ref, b_ref, pos_ref, o_ref):
    # x: (1, tn, P) bf16, w: (P, D) bf16, b: (1, D) f32, pos: (1, tn, D) f32
    acc = jnp.dot(x_ref[0], w_ref[...], preferred_element_type=jnp.float32)
    o_ref[0] = (acc + b_ref[...] + pos_ref[0]).astype(o_ref.dtype)


def blocks_kernel(
    x_ref,                       # (Bb, Nv, D) bf16 tokens (fetched once per batch tile)
    ln1w_ref, ln1b_ref,          # (1, 1, D) f32
    qw_ref, kw_ref, vw_ref,      # (1, H, D, hd) bf16 (attn scale folded into q)
    pw_ref,                      # (1, H, hd, D) bf16 (per-head proj)
    pb_ref,                      # (1, 1, D) f32
    ln2w_ref, ln2b_ref,          # (1, 1, D) f32
    fc1w_ref, fc1b_ref,          # (1, D, HD) bf16 / (1, 1, HD) f32
    fc2w_ref, fc2b_ref,          # (1, HD, D) bf16 / (1, 1, D) f32
    normw_ref, normb_ref,        # (1, D) f32 (final norm)
    o_ref,                       # (Bb, Nv, D) f32 output
    act_ref,                     # VMEM (Bb, Nv, D) f32: resident activation across l
    *,
    num_heads,
):
    l = pl.program_id(1)
    n_layers = pl.num_programs(1)
    Bb, Nv, D = act_ref.shape

    @pl.when(l == 0)
    def _():
        act_ref[...] = x_ref[...].astype(jnp.float32)

    # All Bb batch elements share a single weight fetch per layer; per-batch
    # attention / matmuls are unrolled (Bb is small by construction).
    for b in range(Bb):
        x = act_ref[b]                                             # (Nv, D) f32

        # ---- attention branch: x + sum_h softmax(q_h k_h^T) v_h Wproj_h + b_proj ----
        xn = _layernorm(x, ln1w_ref[0], ln1b_ref[0]).astype(jnp.bfloat16)
        attn = jnp.zeros((Nv, D), jnp.float32)
        for h in range(num_heads):
            qh = jnp.dot(xn, qw_ref[0, h],
                         preferred_element_type=jnp.float32).astype(jnp.bfloat16)
            kh = jnp.dot(xn, kw_ref[0, h],
                         preferred_element_type=jnp.float32).astype(jnp.bfloat16)
            vh = jnp.dot(xn, vw_ref[0, h],
                         preferred_element_type=jnp.float32).astype(jnp.bfloat16)
            s = jax.lax.dot_general(qh, kh, (((1,), (1,)), ((), ())),
                                    preferred_element_type=jnp.float32)   # (Nv, Nv)
            s = s - jnp.max(s, axis=-1, keepdims=True)
            p = jnp.exp(s)
            p = p * pl.reciprocal(jnp.sum(p, axis=-1, keepdims=True), approx=True)
            oh = jnp.dot(p.astype(jnp.bfloat16), vh,
                         preferred_element_type=jnp.float32)              # (Nv, hd)
            attn = attn + jnp.dot(oh.astype(jnp.bfloat16), pw_ref[0, h],
                                  preferred_element_type=jnp.float32)     # (Nv, D)
        x = x + attn + pb_ref[0]

        # ---- MLP branch: x + fc2(gelu(fc1(LN2(x)))) ----
        xn2 = _layernorm(x, ln2w_ref[0], ln2b_ref[0]).astype(jnp.bfloat16)
        h1 = jnp.dot(xn2, fc1w_ref[0], preferred_element_type=jnp.float32) + fc1b_ref[0]
        h1 = _gelu_tanh(h1)
        h2 = jnp.dot(h1.astype(jnp.bfloat16), fc2w_ref[0],
                     preferred_element_type=jnp.float32) + fc2b_ref[0]
        x = x + h2

        @pl.when(l < n_layers - 1)
        def _():
            act_ref[b] = x

        @pl.when(l == n_layers - 1)
        def _():
            o_ref[b] = _layernorm(x, normw_ref[...], normb_ref[...])


# ----------------------------------------------------------------------------
# Wrappers (pallas_call plumbing)
# ----------------------------------------------------------------------------
def _row_tile(n, max_tile=512):
    for t in (512, 256, 128, 64, 32, 16, 8):
        if t <= max_tile and n % t == 0:
            return t
    return n


def patch_embed_proj(x_patches, w, b, pos):
    # x_patches: (B, Nv, P) bf16, w: (P, D) bf16, b: (1, D) f32, pos: (B, Nv, D) f32
    B, Nv, P = x_patches.shape
    D = w.shape[1]
    tn = _row_tile(Nv)
    return pl.pallas_call(
        patch_embed_kernel,
        out_shape=jax.ShapeDtypeStruct((B, Nv, D), jnp.bfloat16),
        grid=(B, Nv // tn),
        in_specs=[
            pl.BlockSpec((1, tn, P), lambda bi, ni: (bi, ni, 0)),
            pl.BlockSpec((P, D), lambda bi, ni: (0, 0)),
            pl.BlockSpec((1, D), lambda bi, ni: (0, 0)),
            pl.BlockSpec((1, tn, D), lambda bi, ni: (bi, ni, 0)),
        ],
        out_specs=pl.BlockSpec((1, tn, D), lambda bi, ni: (bi, ni, 0)),
        compiler_params=pltpu.CompilerParams(
            dimension_semantics=("parallel", "parallel"),
            vmem_limit_bytes=VMEM_LIMIT,
        ),
    )(x_patches, w, b, pos)


def _pick_batch_fold(B, Nv, D, HD, budget):
    # Fold as many batch elements into one grid step as the VMEM budget allows
    # so layer weights are fetched once per batch *tile* rather than per batch.
    wts = 2 * (4 * D * D + 2 * D * HD) * 2           # double-buffered bf16 layer weights
    inter = Nv * (4 * HD + 16 * D) + 4 * Nv * Nv     # one batch's live f32 intermediates

    def need(bb):
        # bf16 input block (x2 buf) + f32 output block (x2 buf) + f32 act scratch
        return wts + inter + bb * Nv * D * (2 * 2 + 2 * 4 + 4)

    for bb in range(B, 0, -1):
        if B % bb == 0 and need(bb) <= budget:
            return bb
    return 1


def encoder_blocks(x_vis, p, num_heads):
    # x_vis: (B, Nv, D) bf16; runs all transformer blocks + the final LayerNorm
    # in a single pallas_call with grid (B // Bb, L).
    B, Nv, D = x_vis.shape
    L, H = p["qw"].shape[:2]
    HD = p["fc1w"].shape[-1]
    Bb = _pick_batch_fold(B, Nv, D, HD, VMEM_FOLD_BUDGET)
    kernel = partial(blocks_kernel, num_heads=num_heads)

    def per_layer(arr):
        zeros = (0,) * (arr.ndim - 1)
        return pl.BlockSpec((1,) + tuple(arr.shape[1:]), lambda bt, l, z=zeros: (l,) + z)

    in_specs = [
        pl.BlockSpec((Bb, Nv, D), lambda bt, l: (bt, 0, 0)),    # tokens (per batch tile)
        per_layer(p["ln1w"]), per_layer(p["ln1b"]),
        per_layer(p["qw"]), per_layer(p["kw"]), per_layer(p["vw"]),
        per_layer(p["pw"]), per_layer(p["pb"]),
        per_layer(p["ln2w"]), per_layer(p["ln2b"]),
        per_layer(p["fc1w"]), per_layer(p["fc1b"]),
        per_layer(p["fc2w"]), per_layer(p["fc2b"]),
        pl.BlockSpec((1, D), lambda bt, l: (0, 0)),             # final norm w
        pl.BlockSpec((1, D), lambda bt, l: (0, 0)),             # final norm b
    ]
    return pl.pallas_call(
        kernel,
        out_shape=jax.ShapeDtypeStruct((B, Nv, D), jnp.float32),
        grid=(B // Bb, L),
        in_specs=in_specs,
        out_specs=pl.BlockSpec((Bb, Nv, D), lambda bt, l: (bt, 0, 0)),
        scratch_shapes=[pltpu.VMEM((Bb, Nv, D), jnp.float32)],  # resident activation
        compiler_params=pltpu.CompilerParams(
            # NOTE: the layer axis must stay "arbitrary" (activation carried across l,
            # output written only at l == L-1).
            dimension_semantics=("parallel", "arbitrary"),
            vmem_limit_bytes=VMEM_LIMIT,
        ),
    )(
        x_vis,
        p["ln1w"], p["ln1b"], p["qw"], p["kw"], p["vw"], p["pw"], p["pb"],
        p["ln2w"], p["ln2b"], p["fc1w"], p["fc1b"], p["fc2w"], p["fc2b"],
        p["norm_w"], p["norm_b"],
    )


# ----------------------------------------------------------------------------
# Glue: sinusoid table, patchify, parameter construction
# ----------------------------------------------------------------------------
def get_sinusoid_encoding_table_np(n_position, d_hid):
    pos = np.arange(n_position, dtype=np.float64)[:, None]
    hid = np.arange(d_hid, dtype=np.float64)[None, :]
    angle = pos / np.power(10000.0, 2.0 * (np.floor(hid / 2.0)) / d_hid)
    table = np.zeros((n_position, d_hid), dtype=np.float64)
    table[:, 0::2] = np.sin(angle[:, 0::2])
    table[:, 1::2] = np.cos(angle[:, 1::2])
    return table.astype(np.float32)                       # (N, D) numpy (host-side)


def patchify(x, tubelet, ph, pw):
    # x: (B, C, T, H, W) -> (B, N, C*tubelet*ph*pw) with token order (t, h, w)
    B, C, T, H, W = x.shape
    t, h, w = T // tubelet, H // ph, W // pw
    xp = x.reshape(B, C, t, tubelet, h, ph, w, pw)
    xp = xp.transpose(0, 2, 4, 6, 1, 3, 5, 7)             # (B,t,h,w,C,pt,ph,pw)
    return xp.reshape(B, t * h * w, C * tubelet * ph * pw)


def xavier_uniform(key, out_f, in_f):
    limit = float(np.sqrt(6.0 / (in_f + out_f)))
    return jax.random.uniform(key, (out_f, in_f), jnp.float32, -limit, limit)


def make_encoder_params(key, embed_dim, depth, mlp_ratio, patch_dim, num_heads):
    D = embed_dim
    HD = int(D * mlp_ratio)
    H = num_heads
    hd = D // H
    scale = hd ** -0.5
    keys = jax.random.split(key, 2 + depth * 4)
    ki = iter(range(len(keys)))

    conv_w = 0.02 * jax.random.normal(keys[next(ki)], (D, patch_dim), jnp.float32)
    conv_b = 0.02 * jax.random.normal(keys[next(ki)], (1, D), jnp.float32)

    ones = jnp.ones((1, D), jnp.float32)
    zeros = jnp.zeros((1, D), jnp.float32)
    zeros_hd = jnp.zeros((1, HD), jnp.float32)

    qw, kw, vw, pw, pb = [], [], [], [], []
    fc1w, fc1b, fc2w, fc2b = [], [], [], []
    ln1w, ln1b, ln2w, ln2b = [], [], [], []
    for _ in range(depth):
        wqkv = xavier_uniform(keys[next(ki)], 3 * D, D)          # (3D, D), no qkv bias
        wq, wk, wv = wqkv[:D], wqkv[D:2 * D], wqkv[2 * D:]
        # per-head stacks (H, D, hd); attention scale folded into q
        qw.append(wq.T.reshape(D, H, hd).transpose(1, 0, 2) * scale)
        kw.append(wk.T.reshape(D, H, hd).transpose(1, 0, 2))
        vw.append(wv.T.reshape(D, H, hd).transpose(1, 0, 2))
        wp = xavier_uniform(keys[next(ki)], D, D)                # (D_out, D_in)
        pw.append(wp.T.reshape(H, hd, D))                        # per-head (hd, D)
        pb.append(zeros)
        f1 = xavier_uniform(keys[next(ki)], HD, D)
        f2 = xavier_uniform(keys[next(ki)], D, HD)
        fc1w.append(f1.T); fc1b.append(zeros_hd)
        fc2w.append(f2.T); fc2b.append(zeros)
        ln1w.append(ones); ln1b.append(zeros)
        ln2w.append(ones); ln2b.append(zeros)

    return {
        "conv_w_t": conv_w.T.astype(jnp.bfloat16),               # (P, D) bf16
        "conv_b": conv_b,                                        # (1, D) f32
        "ln1w": jnp.stack(ln1w), "ln1b": jnp.stack(ln1b),        # (L, 1, D) f32
        "qw": jnp.stack(qw).astype(jnp.bfloat16),                # (L, H, D, hd)
        "kw": jnp.stack(kw).astype(jnp.bfloat16),
        "vw": jnp.stack(vw).astype(jnp.bfloat16),
        "pw": jnp.stack(pw).astype(jnp.bfloat16),                # (L, H, hd, D)
        "pb": jnp.stack(pb),                                     # (L, 1, D) f32
        "ln2w": jnp.stack(ln2w), "ln2b": jnp.stack(ln2b),
        "fc1w": jnp.stack(fc1w).astype(jnp.bfloat16), "fc1b": jnp.stack(fc1b),
        "fc2w": jnp.stack(fc2w).astype(jnp.bfloat16), "fc2b": jnp.stack(fc2b),
        "norm_w": ones, "norm_b": zeros,                         # (1, D) f32
    }


def cwm_encoder_forward(x, mask_np, params, cfg):
    """Forward pass of CWMEncoder (move_pos=None path).  head = Identity."""
    B = x.shape[0]
    D = cfg["embed_dim"]

    # Host-side visible-token indices (module assumes equal count per batch).
    counts = (~mask_np).sum(axis=1)
    assert np.all(counts == counts[0]), "equal visible-token count per batch required"
    vis_idx_np = np.stack([np.where(~mask_np[b])[0] for b in range(B)]).astype(np.int32)

    # --- patch embed (Conv3d with stride == kernel == patchify + matmul) + pos ---
    # The visible-token gather is applied at the patch level (fuses into the
    # patchify transpose in XLA), and the sinusoid pos table is gathered in
    # numpy, so no full (B, N, D) token tensor is ever materialized in HBM.
    x_patches = patchify(x, cfg["tubelet"], cfg["ph"], cfg["pw"])            # (B, N, P)
    N = x_patches.shape[1]
    x_patches_vis = jnp.take_along_axis(
        x_patches, jnp.asarray(vis_idx_np)[:, :, None], axis=1
    ).astype(jnp.bfloat16)                                                   # (B, Nv, P)

    pos_np = get_sinusoid_encoding_table_np(N, D)                            # detached table
    pos_vis = jnp.asarray(pos_np[vis_idx_np])                                # (B, Nv, D) f32

    tokens_vis = patch_embed_proj(
        x_patches_vis, params["conv_w_t"], params["conv_b"], pos_vis
    )                                                                        # (B, Nv, D) bf16

    # TODO(synk): move_pos/static_pos branch (utils.sample_embedding grid-sample)
    # is not implemented; it is only taken when move_pos is not None.

    # --- all transformer blocks + final LayerNorm (single fused pallas_call) ---
    return encoder_blocks(tokens_vis, params, cfg["num_heads"])


# ----------------------------------------------------------------------------
# Main
# ----------------------------------------------------------------------------
if __name__ == "__main__":
    # Small config consistent with the module's forward.
    B = 2
    img_size = 16
    ph = pw = 8
    tubelet = 2
    num_frames = 4
    in_chans = 3
    embed_dim = 32
    depth = 2
    num_heads = 4
    mlp_ratio = 4.0

    cfg = dict(embed_dim=embed_dim, num_heads=num_heads, tubelet=tubelet, ph=ph, pw=pw)

    t = num_frames // tubelet
    h = img_size // ph
    w = img_size // pw
    num_patches = t * h * w                       # 8
    patch_dim = in_chans * tubelet * ph * pw      # 384

    key = jax.random.PRNGKey(0)
    k_x, k_params = jax.random.split(key)

    # video input, NCTHW
    x = jax.random.normal(k_x, (B, in_chans, num_frames, img_size, img_size), jnp.float32)

    # boolean mask (B, num_patches); equal visible count per batch element
    mask_np = np.zeros((B, num_patches), dtype=bool)
    mask_np[0, [1, 3, 5, 7]] = True
    mask_np[1, [0, 2, 4, 6]] = True

    params = make_encoder_params(k_params, embed_dim, depth, mlp_ratio, patch_dim, num_heads)

    out = cwm_encoder_forward(x, mask_np, params, cfg)
    out = jax.block_until_ready(out)

    assert out.shape == (B, num_patches - 4, embed_dim), out.shape
    assert bool(jnp.all(jnp.isfinite(out)))
    print("KERNEL_OK")
</pallas_src>

<mosaic_0001>
module attributes {stable_mosaic.version = 11 : i64} {
  func.func @patch_embed_kernel(%arg0: i32, %arg1: i32, %arg2: memref<1x4x384xbf16, #tpu.memory_space<vmem>>, %arg3: memref<384x32xbf16, #tpu.memory_space<vmem>>, %arg4: memref<1x32xf32, #tpu.memory_space<vmem>>, %arg5: memref<1x4x32xf32, #tpu.memory_space<vmem>>, %arg6: memref<1x4x32xbf16, #tpu.memory_space<vmem>>) attributes {dimension_semantics = [#tpu.dimension_semantics<parallel>, #tpu.dimension_semantics<parallel>], iteration_bounds = array<i64: 2, 1>, scalar_prefetch = 0 : i64, scratch_operands = 0 : i64, tpu.core_type = #tpu.core_type<tc>, window_params = [{transform_indices = @transform_0, window_bounds = array<i64: 1, 4, 384>}, {pipeline_mode = #tpu.pipeline_mode<synchronous>, transform_indices = @transform_1, window_bounds = array<i64: 384, 32>}, {pipeline_mode = #tpu.pipeline_mode<synchronous>, transform_indices = @transform_2, window_bounds = array<i64: 1, 32>}, {transform_indices = @transform_3, window_bounds = array<i64: 1, 4, 32>}, {transform_indices = @transform_4, window_bounds = array<i64: 1, 4, 32>}]} {
    %c0 = arith.constant 0 : index
    %c0_0 = arith.constant 0 : index
    %c0_1 = arith.constant 0 : index
    %0 = vector.load %arg2[%c0, %c0_0, %c0_1] : memref<1x4x384xbf16, #tpu.memory_space<vmem>>, vector<1x4x384xbf16>
    %1 = vector.shape_cast %0 : vector<1x4x384xbf16> to vector<4x384xbf16>
    %c0_2 = arith.constant 0 : index
    %c0_3 = arith.constant 0 : index
    %2 = vector.load %arg3[%c0_2, %c0_3] : memref<384x32xbf16, #tpu.memory_space<vmem>>, vector<384x32xbf16>
    %cst = arith.constant dense<0.000000e+00> : vector<4x32xf32>
    %3 = tpu.matmul %1, %2, %cst {dimension_numbers = #tpu.dot_dimension_numbers<[1], [0], [0], [1], [0, 0, 1, 1], [], []>} : vector<4x384xbf16>, vector<384x32xbf16>, vector<4x32xf32> -> vector<4x32xf32>
    %c0_4 = arith.constant 0 : index
    %c0_5 = arith.constant 0 : index
    %4 = vector.load %arg4[%c0_4, %c0_5] : memref<1x32xf32, #tpu.memory_space<vmem>>, vector<1x32xf32>
    %5 = vector.broadcast %4 : vector<1x32xf32> to vector<4x32xf32>
    %6 = arith.addf %3, %5 : vector<4x32xf32>
    %c0_6 = arith.constant 0 : index
    %c0_7 = arith.constant 0 : index
    %c0_8 = arith.constant 0 : index
    %7 = vector.load %arg5[%c0_6, %c0_7, %c0_8] : memref<1x4x32xf32, #tpu.memory_space<vmem>>, vector<1x4x32xf32>
    %8 = vector.shape_cast %7 : vector<1x4x32xf32> to vector<4x32xf32>
    %9 = arith.addf %6, %8 : vector<4x32xf32>
    %10 = arith.truncf %9 : vector<4x32xf32> to vector<4x32xbf16>
    %c0_9 = arith.constant 0 : index
    %c0_10 = arith.constant 0 : index
    %c0_11 = arith.constant 0 : index
    %11 = vector.load %arg6[%c0_9, %c0_10, %c0_11] : memref<1x4x32xbf16, #tpu.memory_space<vmem>>, vector<1x4x32xbf16>
    %12 = vector.shape_cast %11 : vector<1x4x32xbf16> to vector<4x32xbf16>
    %13 = vector.shape_cast %10 : vector<4x32xbf16> to vector<1x4x32xbf16>
    tpu.vector_store %arg6[%c0_9, %c0_10, %c0_11], %13 {strides = array<i32>} : memref<1x4x32xbf16, #tpu.memory_space<vmem>>, vector<1x4x32xbf16>,
    return
  }
  func.func @transform_0(%arg0: i32, %arg1: i32) -> (i32, i32, i32) {
    %c0_i32 = arith.constant 0 : i32
    %c0_i32_0 = arith.constant 0 : i32
    return %arg0, %arg1, %c0_i32 : i32, i32, i32
  }
  func.func @transform_1(%arg0: i32, %arg1: i32) -> (i32, i32) {
    %c0_i32 = arith.constant 0 : i32
    %c0_i32_0 = arith.constant 0 : i32
    %c0_i32_1 = arith.constant 0 : i32
    return %c0_i32, %c0_i32_0 : i32, i32
  }
  func.func @transform_2(%arg0: i32, %arg1: i32) -> (i32, i32) {
    %c0_i32 = arith.constant 0 : i32
    %c0_i32_0 = arith.constant 0 : i32
    %c0_i32_1 = arith.constant 0 : i32
    return %c0_i32, %c0_i32_0 : i32, i32
  }
  func.func @transform_3(%arg0: i32, %arg1: i32) -> (i32, i32, i32) {
    %c0_i32 = arith.constant 0 : i32
    %c0_i32_0 = arith.constant 0 : i32
    return %arg0, %arg1, %c0_i32 : i32, i32, i32
  }
  func.func @transform_4(%arg0: i32, %arg1: i32) -> (i32, i32, i32) {
    %c0_i32 = arith.constant 0 : i32
    %c0_i32_0 = arith.constant 0 : i32
    return %arg0, %arg1, %c0_i32 : i32, i32, i32
  }
}

</mosaic_0001>

<bundles_post_ra>
// kernel: tpu_custom_call.1
= control target key start
LH: loop header
LB: loop body
LE: loop exit
PB: predicated region body
PF: predicated region fallthrough
CT: control target
= control target key end

     0   :  { %9 = vsyncpa [#allocation3], 0  ;;  %s1149_s0 = inlined_call_operand.vmem [shape: bf16[2,4,384], index: 0, kind: input, shape index: {}]   ;;  %s1150_s1 = inlined_call_operand.vmem [shape: bf16[384,32], index: 1, kind: input, shape index: {}]   ;;  %s1151_s2 = inlined_call_operand.vmem [shape: f32[1,32], index: 2, kind: input, shape index: {}]   ;;  %s1152_s3 = inlined_call_operand.vmem [shape: f32[2,4,32], index: 3, kind: input, shape index: {}]   ;;  %s1153_s4 = inlined_call_operand.hbm [shape: bf16[2,4,32], index: 4, kind: output, shape index: {}]  }
   0x1   :  { %11 = vsyncpa [#allocation3 + $0x1], 0  ;;  %s946_s15 = smov 0   ;;  %s948_s16 = smov 0  }
   0x2   :  { %s950_s17 = smov 0   ;;  %s952_s18 = smov 0  }
   0x3   :  { %s954_s19 = smov 0   ;;  %s956_s20 = smov 0  }
   0x4 LB: > { %s665_s21 = sadd.s32 4294967295, %s915_s20   ;;  %s666_s22 = sadd.s32 4294967294, %s915_s20   ;;  %s915_s20 = sphi %s956_s20, %s17_s20   ;;  %s911_s19 = sphi %s954_s19, %s1160_s19   ;;  %s907_s18 = sphi %s952_s18, %s1159_s18   ;;  %s903_s17 = sphi %s950_s17, %s1158_s17   ;;  %s899_s16 = sphi %s948_s16, %s1157_s16   ;;  %s895_s15 = sphi %s946_s15, %s1156_s15  }
   0x5   : > { %s29_s23 = sadd.s32 1, %s911_s19  ;;  %s136_s24 = sadd.s32 1, %s903_s17 }
   0x6   : > { %p31_p0 = scmp.ge.s32.totalorder %s29_s23, 2  ;;  %p146_p1 = scmp.ne.s32.totalorder %s903_s17, %s899_s16 }
   0x7   : > { %p147_p2 = scmp.eq.s32.totalorder %s665_s21, 1  ;;  %p152_p3 = scmp.ne.s32.totalorder %s899_s16, %s895_s15 }
   0x8   : > { %s1162_s23 = smov (%p31_p0, %s29_s23), 0  ;;  %p153_p5 = scmp.eq.s32.totalorder %s666_s22, 1 }
   0x9   : > { %p986_p4 = por %p147_p2, %p146_p1  ;;  %s131_s26 = ssub.s32 %s911_s19, %s1162_s23 }
   0xa   : > { %p669_p6 = scmp.ge.s32.totalorder %s915_s20, 1  ;;  %p134_p7 = scmp.eq.s32.totalorder %s131_s26, 0 }
   0xb   : > { %p993_p8 = por %p153_p5, %p152_p3  ;;  %p199_p9 = scmp.lt.s32.totalorder %s915_s20, 3 }
   0xc   : > { %s999_s28 = scalar_select %p134_p7, %s903_s17, %s136_s24  }
   0xd   : > { %p200_p10 = pnand %p669_p6, %p199_p9 }
   0xe   : > { %v812_v0 = vld [vmem:[%s1150_s1 + $0x40] sm:$0xff] (!%p200_p10)   ;;  %v917_v2 = vmov (!%p200_p10), 0.0   ;;  %v815_v4 = vld [vmem:[%s1150_s1 + $0x48] sm:$0xff] (!%p200_p10)   ;;  %v818_v7 = vld [vmem:[%s1150_s1 + $0x50] sm:$0xff] (!%p200_p10)   ;;  %vm918_vm0 = vmmov (!%p200_p10), 0   ;;  %p236_p11 = scmp.lt.s32.totalorder (!%p200_p10), %s907_s18, 1  ;;  %v314_v20 = vlaneseq (!%p200_p10) }
   0xf   : > { %203 = sbr.rel (%p200_p10) target bundleno = 284 (0x11c), region = 36  ;;  %v813_v1 = vld [vmem:[%s1150_s1] sm:$0xff] (!%p200_p10)   ;;  %733 = vmatprep.subr.bf16.mxu1 (!%p200_p10), %v917_v2  ;;  %702 = vmatprep.subr.bf16.mxu0 (!%p200_p10), %v812_v0  ;;  %v816_v5 = vld [vmem:[%s1150_s1 + $0x8] sm:$0xff] (!%p200_p10)   ;;  %v819_v8 = vld [vmem:[%s1150_s1 + $0x10] sm:$0xff] (!%p200_p10)   ;;  %v919_v24 = vmov (!%p200_p10), 1983009808  }
  0x10   : > { %v814_v3 = vld [vmem:[%s1150_s1 + $0x80] sm:$0xff] (!%p200_p10)   ;;  %703 = vmatpush3.bf16.msra.mxu0 (!%p200_p10), %v813_v1  ;;  %v817_v6 = vld [vmem:[%s1150_s1 + $0x88] sm:$0xff] (!%p200_p10)   ;;  %749 = vmatprep.mubr.msk.bf16.mxu1 (!%p200_p10), %vm918_vm0, %v917_v2  ;;  %v820_v9 = vld [vmem:[%s1150_s1 + $0x90] sm:$0xff] (!%p200_p10)   ;;  %v312_v25 = vunpack.c.l.s4 (!%p200_p10), %v919_v24  ;;  %v315_v26 = vshrl.u32 (!%p200_p10), %v314_v20, 7  ;;  %s233_s9 = sand.u32 (!%p200_p10), 1, %s899_s16   ;;  %vm556_vm1 = vcmask (!%p200_p10), 254976  }
  0x11   : > { %734 = vmatpush3.bf16.msra.mxu1 (!%p200_p10), %v814_v3  ;;  %704 = vmatprep.subr.bf16.mxu0 (!%p200_p10), %v815_v4  ;;  %v821_v10 = vld [vmem:[%s1150_s1 + $0x58] sm:$0xff] (!%p200_p10)   ;;  %v824_v13 = vld [vmem:[%s1150_s1 + $0x60] sm:$0xff] (!%p200_p10)   ;;  %v827_v16 = vld [vmem:[%s1150_s1 + $0x68] sm:$0xff] (!%p200_p10)   ;;  %s670_s13 = sshll.u32 (!%p200_p10), %s233_s9, 1  ;;  %s559_s7 = scalar_lea.sflag (!%p200_p10), [#allocation3], %s233_s9 }
  0x12   : > { %735 = vmatprep.subr.bf16.mxu1 (!%p200_p10), %v917_v2  ;;  %v822_v11 = vld [vmem:[%s1150_s1 + $0x18] sm:$0xff] (!%p200_p10)   ;;  %v825_v14 = vld [vmem:[%s1150_s1 + $0x20] sm:$0xff] (!%p200_p10)   ;;  %v828_v17 = vld [vmem:[%s1150_s1 + $0x28] sm:$0xff] (!%p200_p10)   ;;  %v313_v28 = vunpack.c.0.s8 (!%p200_p10), %v312_v25  ;;  %s235_s26 = scalar_lea.vmem (!%p200_p10), [#allocation2], %s670_s13 }
  0x13   : > { %v823_v12 = vld [vmem:[%s1150_s1 + $0x98] sm:$0xff] (!%p200_p10)   ;;  %v826_v15 = vld [vmem:[%s1150_s1 + $0xa0] sm:$0xff] (!%p200_p10)   ;;  %v829_v18 = vld [vmem:[%s1150_s1 + $0xa8] sm:$0xff] (!%p200_p10)   ;;  %s573_s29 = sshll.u32 (!%p200_p10), %s235_s26, 4  ;;  %s1104_s29 = int_to_ptr.vmem [resolvable:$true] %s573_s29 }
  0x14   : > { %705 = vmatpush3.bf16.msra.mxu0 (!%p200_p10), %v816_v5  ;;  %v830_v19 = vld [vmem:[%s1150_s1 + $0x70] sm:$0xff] (!%p200_p10)   ;;  %v833_v23 = vld [vmem:[%s1150_s1 + $0x78] sm:$0xff] (!%p200_p10)   ;;  %v316_v31 = vsub.s32 (!%p200_p10), %v313_v28, %v315_v26  ;;  %v673_v39 = vld [vmem:[%s1151_s2] ss:$0 sm:$0xff] (!%p200_p10) }
  0x15   : > { %736 = vmatpush3.bf16.msra.mxu1 (!%p200_p10), %v817_v6  ;;  %706 = vmatprep.subr.bf16.mxu0 (!%p200_p10), %v818_v7  ;;  %v831_v21 = vld [vmem:[%s1150_s1 + $0x30] sm:$0xff] (!%p200_p10)   ;;  %v834_v29 = vld [vmem:[%s1150_s1 + $0x38] sm:$0xff] (!%p200_p10)  }
  0x16   : > { %737 = vmatprep.subr.bf16.mxu1 %v917_v2  ;;  %s1053_s24 = scalar_select %p236_p11, %s907_s18, 1  ;;  %v832_v22 = vld [vmem:[%s1150_s1 + $0xb0] sm:$0xff]   ;;  %v836_v32 = vld [vmem:[%s1150_s1 + $0xb8] sm:$0xff]  }
  0x18   : > { %707 = vmatpush3.bf16.msra.mxu0 %v819_v8  ;;  %s753_s8 = smul.u32 6, %s1053_s24  ;;  %s672_s10 = sshll.u32 %s1053_s24, 2 }
  0x19   : > { %738 = vmatpush3.bf16.msra.mxu1 %v820_v9  ;;  %708 = vmatprep.subr.bf16.mxu0 %v821_v10  ;;  %s251_s22 = scalar_lea.vmem %s1152_s3, %s672_s10  ;;  %s699_s24 = sshll.u32 %s907_s18, 5 }
  0x1a   : > { %739 = vmatprep.subr.bf16.mxu1 %v917_v2  ;;  %s244_s21 = scalar_lea.vmem %s1149_s0, %s753_s8  ;;  %v553_v47 = vld [vmem:[%s251_s22] sm:$0xf]  ;;  %s1102_s6 = scalar_lea.hbm %s1153_s4, %s699_s24 }
  0x1b   : > { %v253_v27 = vld [vmem:[%s244_s21] sm:$0x3f]  ;;  %s837_s8 = scalar_lea.vmem %s1104_s29, 32  ;;  %s920_s18 = smov [#allocation2]  }
  0x1c   : > { %709 = vmatpush3.bf16.msra.mxu0 %v822_v11  ;;  %v310_v30 = vcombine.high %v253_v27, %v253_v27  ;;  %v317_v33 = vrot.slane %v253_v27, %v316_v31  ;;  %p838_p12 = scmp.ne.s32.totalorder %s1104_s29, %s837_s8  ;;  %s841_s10 = sshll.u32 %s920_s18, 4  ;;  %s842_s10 = int_to_ptr.vmem [resolvable:$false] %s841_s10 }
  0x1d   : > { %740 = vmatpush3.bf16.msra.mxu1 %v823_v12  ;;  %710 = vmatprep.subr.bf16.mxu0 %v824_v13  ;;  %s843_s11 = scalar_lea.vmem %s842_s10, 64  ;;  %p844_p1 = scmp.lt.s32.totalorder %s1104_s29, %s842_s10 }
  0x1e   : > { %741 = vmatprep.subr.bf16.mxu1 %v917_v2  ;;  %v324_v34 = vrot.slane %v310_v30, %v316_v31  ;;  %v325_v35 = vcombine.high %v317_v33, %v317_v33  ;;  %p839_p13 = pnand %p838_p12, %p986_p4  ;;  %p845_p2 = scmp.lt.s32.totalorder %s843_s11, %s837_s8 }
  0x20   : > { %711 = vmatpush3.bf16.msra.mxu0 %v825_v14  ;;  %505 = vmatprep.mubr.bf16.mxu0 %v325_v35  ;;  %p840_p0 = pneg %p839_p13  ;;  %p846_p3 = por %p845_p2, %p844_p1 }
  0x21   : > { %742 = vmatpush3.bf16.msra.mxu1 %v826_v15  ;;  %712 = vmatprep.subr.bf16.mxu0 %v827_v16 }
  0x22   : > { %743 = vmatprep.subr.bf16.mxu1 %v917_v2  ;;  %p847_p5 = pnand %p846_p3, %p840_p0 }
  0x24   : > { %713 = vmatpush3.bf16.msra.mxu0 %v828_v17 }
  0x25   : > { %744 = vmatpush3.bf16.msra.mxu1 %v829_v18  ;;  %714 = vmatprep.subr.bf16.mxu0 %v830_v19 }
  0x26   : > { %745 = vmatprep.subr.bf16.mxu1 %v917_v2 }
  0x28   : > { %715 = vmatpush3.bf16.msra.mxu0 %v831_v21 }
  0x29   : > { %746 = vmatpush3.bf16.msra.mxu1 %v832_v22  ;;  %716 = vmatprep.subr.bf16.mxu0 %v833_v23 }
  0x2a   : > { %747 = vmatprep.subr.bf16.mxu1 %v917_v2 }
  0x2c   : > { %717 = vmatpush3.bf16.msra.mxu0 %v834_v29 }
  0x2d   : > { %748 = vmatpush3.bf16.msra.mxu1 %v836_v32 }
  0x2f   : > { %506 = vmatmul.mubr.bf16.vlgmr.msra.gmra.mrb[0].mxu0 %v317_v33 }
  0x30   : > { %750 = vmatmul.mubr.bf16.vlgmr.msra.gmra.mrb[0].mxu1 %v324_v34 }
 0x102   : > { %v718_v36 = vpop.f32.mrb[0].mxu0 }
 0x103   : > { %v547_v37 = vpop.f32.mrb[0].mxu1  ;;  %v719_v38 = vpop.f32.mrb[1].mxu0 }
 0x104   : > { %v751_v40 = vpop.f32.mrb[1].mxu1  ;;  %v720_v41 = vadd.f32 %v719_v38, %v718_v36  ;;  %v721_v42 = vpop.f32.mrb[2].mxu0 }
 0x105   : > { %v550_v43 = vpop.f32.mrb[2].mxu1  ;;  %v722_v44 = vpop.f32.mrb[3].mxu0 }
 0x106   : > { %v752_v45 = vpop.f32.mrb[3].mxu1  ;;  %v508_v46 = vadd.f32 %v720_v41, %v673_v39 }
 0x108   : > { %v548_v48 = vadd.f32 %v547_v37, %v508_v46 }
 0x10a   : > { %v554_v49 = vadd.f32 %v553_v47, %v548_v48 }
 0x10c   : > { %v555_v50 = vpack.c.bf16 %v554_v49, %v554_v49 }
 0x10e   : > { %557 = vst.msk [vmem:[%s235_s26] sm:$0x3] %vm556_vm1, %v555_v50 }
 0x10f   : > { %850 = shalt.err (!%p847_p5)
}
 0x110   : > { %s851_s9 = scalar_lea.hbm %s1102_s6, 32  ;;  %s855_s14 = scalar_lea.hbm %s1153_s4, 64 }
 0x111   : > { %p852_p6 = scmp.ne.s32.totalorder %s1102_s6, %s851_s9  ;;  %p856_p10 = scmp.lt.u32.totalorder %s1102_s6, %s1153_s4 }
 0x112   : > { %p857_p11 = scmp.lt.u32.totalorder %s855_s14, %s851_s9  ;;  %p859_p13 = scmp.lt.u32.totalorder %s851_s9, %s1102_s6 }
 0x113   : > { %p853_p7 = pnand %p852_p6, %p986_p4 }
 0x114   : > { %p858_p12 = por %p857_p11, %p856_p10 }
 0x115   : > { %p854_p9 = pneg %p853_p7 }
 0x116   : > { %p860_p0 = por %p859_p13, %p858_p12 }
 0x118   : > { %p861_p1 = pnand %p860_p0, %p854_p9 }
 0x11a   : > { %864 = shalt.err (!%p861_p1)
}
 0x11b   : > { %754 = dma.vmem_to_hbm [thread:$0]  (%p986_p4), %s1104_s29, 32, %s1102_s6, %s559_s7  }
 0x11c PF: > { %p760_p2 = scmp.ge.s32.totalorder %s915_s20, 2  ;;  %s585_s24 = sand.u32 1, %s895_s15  }
 0x11d   : > { %s586_s26 = scalar_lea.sflag [#allocation3], %s585_s24 }
 0x11e   : > { %p757_p3 = pnand %p760_p2, %p993_p8 }
 0x120   : > { %890 = dma.done.wait (!%p757_p3), %s586_s26, 32  }
 0x121   : > { %892 = vsyncadd (!%p757_p3), %s586_s26, 4294967264  ;;  %s17_s20 = sadd.s32 1, %s915_s20   ;;  %s1156_s15 = smov %s899_s16 }
 0x122   : > { %p14_p5 = scmp.ge.s32.totalorder %s17_s20, 4   ;;  %s1157_s16 = smov %s903_s17 }
 0x123   : > { %s1158_s17 = smov %s999_s28  ;;  %s1159_s18 = smov %s911_s19 }
 0x124   : > { %s1160_s19 = smov %s1162_s23  ;;  %16 = sbr.rel (!%p14_p5) target bundleno = 4 (0x4), region = 74 }
 0x12b   :  { %591 = vsyncpa [#allocation3], 1 }
 0x12c   :  { %593 = vsyncpa [#allocation3 + $0x1], 1 }

</bundles_post_ra>
